<compile_context>
chip_gen: v7x
topology: tpu7x:2x2x1
jax: 0.10.0
libtpu: 0.0.40
codegen_flags: <defaults>
</compile_context>

<pallas_src>
import functools

import jax
import jax.numpy as jnp
from jax import lax
from jax.experimental import pallas as pl
from jax.experimental.pallas import tpu as pltpu


def _round_up(v, m):
    return (v + m - 1) // m * m


def _self_attention_kernel(x_ref, wf_ref, bf_ref, gamma_ref, o_ref,
                           s_ref, v_ref, *, tq, c, cx, n_qt_per):
    # x_ref:  (1, Cx, Np)  extended channel-major block (rows: C data, ones, pad-mask, 0-pad)
    # wf_ref: (2*Cx, Cx)   fused weights (score block ; value block)
    # bf_ref: (2*Cx, 1)    fused bias    (0 ; bv, 1.0 for denom row, 0-pad)
    # gamma_ref: (1,)      SMEM scalar
    # o_ref:  (1, C, TQ)   output block for this query tile
    # s_ref:  (Cx, Np) f32 persistent score-side projection  (per-batch)
    # v_ref:  (Cx, Np) bf16 persistent value-side projection (per-batch)
    g = pl.program_id(0)
    qi = pl.program_id(2)

    # ---- hoisted once-per-batch fused projection (query-tile axis is sequential) ----
    @pl.when(qi == 0)
    def _():
        pv = jnp.dot(wf_ref[...], x_ref[0],
                     preferred_element_type=jnp.float32) + bf_ref[...]   # (2Cx, Np)
        s_ref[...] = pv[:cx]
        v_ref[...] = pv[cx:].astype(jnp.bfloat16)

    q_start = pl.multiple_of((g * n_qt_per + qi) * tq, tq)
    x_q = x_ref[0, :, pl.ds(q_start, tq)]                                # (Cx, TQ)

    # energy[i, j] = x_i^T (Wq^T Wk) x_j + bq.(Wk x_j)  (+ -1e9 for padded keys)
    # The ones row of x_q pairs with the col-bias row of the score block, so no
    # (TQ, Np) broadcast-add is needed.
    energy = lax.dot_general(
        x_q, s_ref[...], dimension_numbers=(((0,), (0,)), ((), ())),
        preferred_element_type=jnp.float32)                              # (TQ, Np)

    # Softmax over keys with deferred normalization; statistics in f32 (v5e-safe),
    # probabilities cast to bf16 for the MXU.
    m = jnp.max(energy, axis=-1, keepdims=True)                          # (TQ, 1)
    e = jnp.exp(energy - m).astype(jnp.bfloat16)                         # (TQ, Np)

    # One bf16 matmul produces both the attention output (rows [0:C]) and the softmax
    # denominator (row C, from the ones-row of the value block), f32 accumulation.
    raw_ext = lax.dot_general(
        v_ref[...], e, dimension_numbers=(((1,), (1,)), ((), ())),
        preferred_element_type=jnp.float32)                              # (Cx, TQ)
    raw = raw_ext[:c]                                                    # (C, TQ)
    denom = raw_ext[c:c + 1]                                             # (1, TQ)

    gamma = gamma_ref[0]
    o_ref[0] = gamma * (raw * pl.reciprocal(denom, approx=True)) + x_q[:c]


def self_attention_pallas(x_nchw, wq, bq, wk, bk, wv, bv, gamma):
    B, C, H, W = x_nchw.shape
    N = H * W
    f32 = jnp.float32
    NEG_BIG = jnp.float32(-1e9)

    Np = _round_up(N, 128)          # lane-dense spatial extent
    Cx = _round_up(C + 2, 8)        # sublane-aligned extended-channel extent

    # ---- extended channel-major input: rows [0:C]=x, row C=ones, row C+1=key-pad mask ----
    x_cm = x_nchw.reshape(B, C, N).astype(f32)
    x_ext = jnp.zeros((B, Cx, Np), f32)
    x_ext = x_ext.at[:, :C, :N].set(x_cm)
    x_ext = x_ext.at[:, C, :].set(1.0)
    if Np > N:
        x_ext = x_ext.at[:, C + 1, N:].set(1.0)

    # ---- fused weights / bias ----
    wq32, wk32, wv32 = wq.astype(f32), wk.astype(f32), wv.astype(f32)
    m_qk = wq32.T @ wk32                                  # (C, C)  = Wq^T Wk
    w_colbias = wk32.T @ bq.astype(f32)                   # (C,)    -> bq.(Wk x_j)
    w_fused = jnp.zeros((2 * Cx, Cx), f32)
    w_fused = w_fused.at[:C, :C].set(m_qk)                # score rows
    w_fused = w_fused.at[C, :C].set(w_colbias)            # per-key bias row
    w_fused = w_fused.at[C, C + 1].set(NEG_BIG)           # kills padded keys via mask row
    w_fused = w_fused.at[Cx:Cx + C, :C].set(wv32)         # value rows
    b_fused = jnp.zeros((2 * Cx, 1), f32)
    b_fused = b_fused.at[Cx:Cx + C, 0].set(bv.astype(f32))
    b_fused = b_fused.at[Cx + C, 0].set(1.0)              # ones row -> softmax denominator
    gamma_s = gamma.astype(f32).reshape(1)

    # ---- generation-aware VMEM budget and query-tile size ----
    try:
        vmem_cap = int(pltpu.get_tpu_info().vmem_capacity_bytes)
    except Exception:
        vmem_cap = 64 << 20
    budget = int(vmem_cap * 0.78)      # headroom for compiler temporaries / spill

    def vmem_est(tq_):
        return (2 * Cx * Np * 4        # x_ext block (double-buffered)
                + Cx * Np * 4          # score scratch (f32)
                + Cx * Np * 2          # value scratch (bf16)
                + 2 * Cx * Np * 4      # fused-projection temporary
                + tq_ * Np * 4         # energy (f32)
                + tq_ * Np * 2         # e (bf16)
                + 2 * C * tq_ * 4      # output block (double-buffered)
                + (4 << 20))           # slack

    tq = 128
    for cand in (512, 256, 128):
        if Np % cand == 0 and vmem_est(cand) <= budget:
            tq = cand
            break
    n_qt = Np // tq

    # ---- megacore: when B == 1 give the second TensorCore a parallel slice of q ----
    qsplit = 2 if (B == 1 and n_qt >= 2 and n_qt % 2 == 0) else 1
    n_qt_per = n_qt // qsplit

    vmem_limit = int(min(budget, max(32 << 20, vmem_est(tq))))

    kernel = functools.partial(_self_attention_kernel,
                               tq=tq, c=C, cx=Cx, n_qt_per=n_qt_per)

    out_cm = pl.pallas_call(
        kernel,
        out_shape=jax.ShapeDtypeStruct((B, C, Np), f32),
        grid_spec=pltpu.PrefetchScalarGridSpec(
            num_scalar_prefetch=0,
            grid=(qsplit, B, n_qt_per),
            in_specs=[
                pl.BlockSpec((1, Cx, Np), lambda g, b, q: (b, 0, 0)),      # x (full spatial)
                pl.BlockSpec((2 * Cx, Cx), lambda g, b, q: (0, 0)),        # fused weights
                pl.BlockSpec((2 * Cx, 1), lambda g, b, q: (0, 0)),         # fused bias
                pl.BlockSpec(memory_space=pltpu.MemorySpace.SMEM),         # gamma scalar
            ],
            out_specs=pl.BlockSpec(
                (1, C, tq), lambda g, b, q: (b, 0, g * n_qt_per + q)),
            scratch_shapes=[
                pltpu.VMEM((Cx, Np), f32),            # score-side projection (per batch)
                pltpu.VMEM((Cx, Np), jnp.bfloat16),   # value-side projection (per batch)
            ],
        ),
        compiler_params=pltpu.CompilerParams(
            dimension_semantics=("parallel", "parallel", "arbitrary"),
            vmem_limit_bytes=vmem_limit,
        ),
    )(x_ext, w_fused, b_fused, gamma_s)

    # Drop padded query columns; (B, C, N) -> NCHW is a pure reshape.
    return out_cm[:, :, :N].reshape(B, C, H, W)


def self_attention_ref(x_nchw, wq, bq, wk, bk, wv, bv, gamma):
    """Plain-JAX reference mirroring the PyTorch forward exactly (f32)."""
    B, C, H, W = x_nchw.shape
    N = H * W
    xf = x_nchw.reshape(B, C, N)                                        # (B, C, N)
    q = jnp.einsum('oc,bcn->bon', wq, xf) + bq[None, :, None]           # (B, C//8, N)
    k = jnp.einsum('oc,bcn->bon', wk, xf) + bk[None, :, None]           # (B, C//8, N)
    v = jnp.einsum('oc,bcn->bon', wv, xf) + bv[None, :, None]           # (B, C, N)
    energy = jnp.einsum('bci,bcj->bij', q, k)                           # (B, N, N)
    attn = jax.nn.softmax(energy, axis=-1)
    out = jnp.einsum('bcj,bij->bci', v, attn)                           # (B, C, N)
    out = out.reshape(B, C, H, W)
    return gamma[0] * out + x_nchw


if __name__ == "__main__":
    B, C, H, W = 2, 16, 8, 8          # C // 8 = 2, N = 64 (exercises the lane-padding path)
    C8 = C // 8

    key = jax.random.PRNGKey(0)
    kx, kq, kk, kv, kbq, kbk, kbv = jax.random.split(key, 7)

    x = jax.random.normal(kx, (B, C, H, W), dtype=jnp.float32)

    # Deterministic synthetic parameters (1x1 conv weights squeezed to (C_out, C_in)).
    scale = 1.0 / jnp.sqrt(jnp.float32(C))
    wq = jax.random.normal(kq, (C8, C), dtype=jnp.float32) * scale
    wk = jax.random.normal(kk, (C8, C), dtype=jnp.float32) * scale
    wv = jax.random.normal(kv, (C, C), dtype=jnp.float32) * scale
    bq = jax.random.normal(kbq, (C8,), dtype=jnp.float32) * 0.01
    bk = jax.random.normal(kbk, (C8,), dtype=jnp.float32) * 0.01
    bv = jax.random.normal(kbv, (C,), dtype=jnp.float32) * 0.01
    # PyTorch initializes gamma to 0 (output == x); use 0.5 so the attention path is exercised.
    gamma = jnp.array([0.5], dtype=jnp.float32)

    out = self_attention_pallas(x, wq, bq, wk, bk, wv, bv, gamma)
    out = jax.block_until_ready(out)

    ref = self_attention_ref(x, wq, bq, wk, bk, wv, bv, gamma)
    assert out.shape == (B, C, H, W)
    # Tolerance relaxed vs the pure-f32 reference: the attention-output matmul runs with
    # bf16 operands (f32 accumulation) and the denominator uses the approx EUP reciprocal.
    assert jnp.allclose(out, ref, atol=2e-2, rtol=2e-2), "mismatch vs reference"

    print("KERNEL_OK")
</pallas_src>

<mosaic_0001>
module attributes {stable_mosaic.version = 11 : i64} {
  func.func @_self_attention_kernel(%arg0: i32, %arg1: i32, %arg2: i32, %arg3: memref<1x24x128xf32, #tpu.memory_space<vmem>>, %arg4: memref<48x24xf32, #tpu.memory_space<vmem>>, %arg5: memref<48x1xf32, #tpu.memory_space<vmem>>, %arg6: memref<1xf32, #tpu.memory_space<smem>>, %arg7: memref<1x16x128xf32, #tpu.memory_space<vmem>>, %arg8: memref<24x128xf32, #tpu.memory_space<vmem>>, %arg9: memref<24x128xbf16, #tpu.memory_space<vmem>>) attributes {dimension_semantics = [#tpu.dimension_semantics<parallel>, #tpu.dimension_semantics<parallel>, #tpu.dimension_semantics<arbitrary>], iteration_bounds = array<i64: 1, 2, 1>, scalar_prefetch = 0 : i64, scratch_operands = 2 : i64, tpu.core_type = #tpu.core_type<tc>, window_params = [{transform_indices = @transform_0, window_bounds = array<i64: 1, 24, 128>}, {pipeline_mode = #tpu.pipeline_mode<synchronous>, transform_indices = @transform_1, window_bounds = array<i64: 48, 24>}, {pipeline_mode = #tpu.pipeline_mode<synchronous>, transform_indices = @transform_2, window_bounds = array<i64: 48, 1>}, {transform_indices = @transform_3, window_bounds = array<i64: 1>}, {transform_indices = @transform_4, window_bounds = array<i64: 1, 16, 128>}]} {
    %c0_i32 = arith.constant 0 : i32
    %0 = arith.cmpi eq, %arg2, %c0_i32 : i32
    %1 = arith.extui %0 : i1 to i32
    %c0_i32_0 = arith.constant 0 : i32
    %2 = arith.cmpi ne, %1, %c0_i32_0 : i32
    scf.if %2 {
      %c0_12 = arith.constant 0 : index
      %c0_13 = arith.constant 0 : index
      %33 = vector.load %arg4[%c0_12, %c0_13] : memref<48x24xf32, #tpu.memory_space<vmem>>, vector<48x24xf32>
      %c0_14 = arith.constant 0 : index
      %c0_15 = arith.constant 0 : index
      %c0_16 = arith.constant 0 : index
      %34 = vector.load %arg3[%c0_14, %c0_15, %c0_16] : memref<1x24x128xf32, #tpu.memory_space<vmem>>, vector<1x24x128xf32>
      %35 = vector.shape_cast %34 : vector<1x24x128xf32> to vector<24x128xf32>
      %cst_17 = arith.constant dense<0.000000e+00> : vector<48x128xf32>
      %36 = tpu.matmul %33, %35, %cst_17 {dimension_numbers = #tpu.dot_dimension_numbers<[1], [0], [0], [1], [0, 0, 1, 1], [], []>} : vector<48x24xf32>, vector<24x128xf32>, vector<48x128xf32> -> vector<48x128xf32>
      %c0_18 = arith.constant 0 : index
      %c0_19 = arith.constant 0 : index
      %37 = vector.load %arg5[%c0_18, %c0_19] : memref<48x1xf32, #tpu.memory_space<vmem>>, vector<48x1xf32>
      %38 = vector.broadcast %37 : vector<48x1xf32> to vector<48x128xf32>
      %39 = arith.addf %36, %38 : vector<48x128xf32>
      %40 = vector.extract_strided_slice %39 {offsets = [0, 0], sizes = [24, 128], strides = [1, 1]} : vector<48x128xf32> to vector<24x128xf32>
      %c0_20 = arith.constant 0 : index
      %c0_21 = arith.constant 0 : index
      %41 = vector.load %arg8[%c0_20, %c0_21] : memref<24x128xf32, #tpu.memory_space<vmem>>, vector<24x128xf32>
      tpu.vector_store %arg8[%c0_20, %c0_21], %40 {strides = array<i32>} : memref<24x128xf32, #tpu.memory_space<vmem>>, vector<24x128xf32>,
      %42 = vector.extract_strided_slice %39 {offsets = [24, 0], sizes = [24, 128], strides = [1, 1]} : vector<48x128xf32> to vector<24x128xf32>
      %43 = arith.truncf %42 : vector<24x128xf32> to vector<24x128xbf16>
      %c0_22 = arith.constant 0 : index
      %c0_23 = arith.constant 0 : index
      %44 = vector.load %arg9[%c0_22, %c0_23] : memref<24x128xbf16, #tpu.memory_space<vmem>>, vector<24x128xbf16>
      tpu.vector_store %arg9[%c0_22, %c0_23], %43 {strides = array<i32>} : memref<24x128xbf16, #tpu.memory_space<vmem>>, vector<24x128xbf16>,
    } else {
    }
    %c1_i32 = arith.constant 1 : i32
    %3 = arith.muli %arg0, %c1_i32 : i32
    %4 = arith.addi %3, %arg2 : i32
    %c128_i32 = arith.constant 128 : i32
    %5 = arith.muli %4, %c128_i32 : i32
    %6 = tpu.assume_multiple %5, 128 : i32
    %c0 = arith.constant 0 : index
    %c0_1 = arith.constant 0 : index
    %7 = arith.index_cast %6 : i32 to index
    %8 = vector.load %arg3[%c0, %c0_1, %7] : memref<1x24x128xf32, #tpu.memory_space<vmem>>, vector<1x24x128xf32>
    %9 = vector.shape_cast %8 : vector<1x24x128xf32> to vector<24x128xf32>
    %c0_2 = arith.constant 0 : index
    %c0_3 = arith.constant 0 : index
    %10 = vector.load %arg8[%c0_2, %c0_3] : memref<24x128xf32, #tpu.memory_space<vmem>>, vector<24x128xf32>
    %cst = arith.constant dense<0.000000e+00> : vector<128x128xf32>
    %11 = tpu.matmul %9, %10, %cst {dimension_numbers = #tpu.dot_dimension_numbers<[0], [0], [1], [1], [0, 1, 1, 1], [], []>} : vector<24x128xf32>, vector<24x128xf32>, vector<128x128xf32> -> vector<128x128xf32>
    %cst_4 = arith.constant dense<0xFF800000> : vector<128xf32>
    %12 = vector.multi_reduction <maximumf>, %11, %cst_4 [1] : vector<128x128xf32> to vector<128xf32>
    %13 = vector.shape_cast %12 : vector<128xf32> to vector<128x1xf32>
    %14 = vector.broadcast %13 : vector<128x1xf32> to vector<128x128xf32>
    %15 = arith.subf %11, %14 : vector<128x128xf32>
    %16 = math.exp %15 : vector<128x128xf32>
    %17 = arith.truncf %16 : vector<128x128xf32> to vector<128x128xbf16>
    %c0_5 = arith.constant 0 : index
    %c0_6 = arith.constant 0 : index
    %18 = vector.load %arg9[%c0_5, %c0_6] : memref<24x128xbf16, #tpu.memory_space<vmem>>, vector<24x128xbf16>
    %cst_7 = arith.constant dense<0.000000e+00> : vector<24x128xf32>
    %19 = tpu.matmul %18, %17, %cst_7 {dimension_numbers = #tpu.dot_dimension_numbers<[1], [1], [0], [0], [0, 0, 1, 0], [], []>} : vector<24x128xbf16>, vector<128x128xbf16>, vector<24x128xf32> -> vector<24x128xf32>
    %20 = vector.extract_strided_slice %19 {offsets = [0, 0], sizes = [16, 128], strides = [1, 1]} : vector<24x128xf32> to vector<16x128xf32>
    %21 = vector.extract_strided_slice %19 {offsets = [16, 0], sizes = [1, 128], strides = [1, 1]} : vector<24x128xf32> to vector<1x128xf32>
    %c0_8 = arith.constant 0 : index
    %22 = memref.load %arg6[%c0_8] : memref<1xf32, #tpu.memory_space<smem>>
    %23 = tpu.reciprocal %21 {approx = true} : vector<1x128xf32> -> vector<1x128xf32>
    %24 = vector.broadcast %23 : vector<1x128xf32> to vector<16x128xf32>
    %25 = arith.mulf %20, %24 : vector<16x128xf32>
    %26 = vector.broadcast %22 : f32 to vector<16x128xf32>
    %27 = arith.mulf %26, %25 : vector<16x128xf32>
    %28 = vector.extract_strided_slice %9 {offsets = [0, 0], sizes = [16, 128], strides = [1, 1]} : vector<24x128xf32> to vector<16x128xf32>
    %29 = arith.addf %27, %28 : vector<16x128xf32>
    %c0_9 = arith.constant 0 : index
    %c0_10 = arith.constant 0 : index
    %c0_11 = arith.constant 0 : index
    %30 = vector.load %arg7[%c0_9, %c0_10, %c0_11] : memref<1x16x128xf32, #tpu.memory_space<vmem>>, vector<1x16x128xf32>
    %31 = vector.shape_cast %30 : vector<1x16x128xf32> to vector<16x128xf32>
    %32 = vector.shape_cast %29 : vector<16x128xf32> to vector<1x16x128xf32>
    tpu.vector_store %arg7[%c0_9, %c0_10, %c0_11], %32 {strides = array<i32>} : memref<1x16x128xf32, #tpu.memory_space<vmem>>, vector<1x16x128xf32>,
    return
  }
  func.func @transform_0(%arg0: i32, %arg1: i32, %arg2: i32) -> (i32, i32, i32) {
    %c0_i32 = arith.constant 0 : i32
    %c0_i32_0 = arith.constant 0 : i32
    %c0_i32_1 = arith.constant 0 : i32
    return %arg1, %c0_i32, %c0_i32_0 : i32, i32, i32
  }
  func.func @transform_1(%arg0: i32, %arg1: i32, %arg2: i32) -> (i32, i32) {
    %c0_i32 = arith.constant 0 : i32
    %c0_i32_0 = arith.constant 0 : i32
    %c0_i32_1 = arith.constant 0 : i32
    return %c0_i32, %c0_i32_0 : i32, i32
  }
  func.func @transform_2(%arg0: i32, %arg1: i32, %arg2: i32) -> (i32, i32) {
    %c0_i32 = arith.constant 0 : i32
    %c0_i32_0 = arith.constant 0 : i32
    %c0_i32_1 = arith.constant 0 : i32
    return %c0_i32, %c0_i32_0 : i32, i32
  }
  func.func @transform_3(%arg0: i32, %arg1: i32, %arg2: i32) -> i32 {
    %c0_i32 = arith.constant 0 : i32
    %c0_i32_0 = arith.constant 0 : i32
    return %c0_i32 : i32
  }
  func.func @transform_4(%arg0: i32, %arg1: i32, %arg2: i32) -> (i32, i32, i32) {
    %c1_i32 = arith.constant 1 : i32
    %0 = arith.muli %arg0, %c1_i32 : i32
    %1 = arith.addi %0, %arg2 : i32
    %c0_i32 = arith.constant 0 : i32
    %c0_i32_0 = arith.constant 0 : i32
    return %arg1, %c0_i32, %1 : i32, i32, i32
  }
}

</mosaic_0001>

<bundles_post_ra>
// kernel: tpu_custom_call.1
= control target key start
LH: loop header
LB: loop body
LE: loop exit
PB: predicated region body
PF: predicated region fallthrough
CT: control target
= control target key end

     0   :  { %s1507_s0 = inlined_call_operand.vmem [shape: f32[2,24,128], index: 0, kind: input, shape index: {}]   ;;  %s1508_s1 = inlined_call_operand.vmem [shape: f32[48,24], index: 1, kind: input, shape index: {}]   ;;  %s1509_s2 = inlined_call_operand.vmem [shape: f32[48,1], index: 2, kind: input, shape index: {}]   ;;  %s1510_s3 = inlined_call_operand.<no memory space> [shape: f32[1], index: 3, kind: input, shape index: {}]   ;;  %s1511_s4 = inlined_call_operand.hbm [shape: f32[2,16,128], index: 4, kind: output, shape index: {}]  }
   0x1   :  { %9 = sst [smem:[#allocation4]] %s1510_s3 }
   0x2   :  { %10 = vsyncpa [#allocation6], 0 }
   0x3   :  { %12 = vsyncpa [#allocation6 + $0x1], 0  ;;  %s1267_s17 = smov 0   ;;  %s1269_s18 = smov 0  }
   0x4   :  { %s1271_s19 = smov 0   ;;  %s1273_s20 = smov 0  }
   0x5   :  { %s1275_s21 = smov 0   ;;  %s1277_s22 = smov 0  }
   0x6 LB: > { %s898_s3 = sadd.s32 4294967295, %s1233_s22   ;;  %s899_s23 = sadd.s32 4294967294, %s1233_s22   ;;  %s1233_s22 = sphi %s1277_s22, %s18_s22   ;;  %s1229_s21 = sphi %s1275_s21, %s1518_s21   ;;  %s1225_s20 = sphi %s1273_s20, %s1517_s20   ;;  %s1221_s19 = sphi %s1271_s19, %s1516_s19   ;;  %s1217_s18 = sphi %s1269_s18, %s1515_s18   ;;  %s1213_s17 = sphi %s1267_s17, %s1514_s17  }
   0x7   : > { %s33_s24 = sadd.s32 1, %s1229_s21  ;;  %s137_s25 = sadd.s32 1, %s1221_s19 }
   0x8   : > { %p35_p0 = scmp.ge.s32.totalorder %s33_s24, 2  ;;  %p147_p1 = scmp.ne.s32.totalorder %s1221_s19, %s1217_s18 }
   0x9   : > { %p148_p2 = scmp.eq.s32.totalorder %s898_s3, 1  ;;  %p153_p3 = scmp.ne.s32.totalorder %s1217_s18, %s1213_s17 }
   0xa   : > { %s1520_s24 = smov (%p35_p0, %s33_s24), 0  ;;  %p154_p5 = scmp.eq.s32.totalorder %s899_s23, 1 }
   0xb   : > { %p1307_p4 = por %p148_p2, %p147_p1  ;;  %s132_s27 = ssub.s32 %s1229_s21, %s1520_s24 }
   0xc   : > { %p902_p6 = scmp.ge.s32.totalorder %s1233_s22, 1  ;;  %p135_p7 = scmp.eq.s32.totalorder %s132_s27, 0 }
   0xd   : > { %p1314_p8 = por %p154_p5, %p153_p3  ;;  %p189_p9 = scmp.lt.s32.totalorder %s1233_s22, 3 }
   0xe   : > { %s1320_s29 = scalar_select %p135_p7, %s1221_s19, %s137_s25  }
   0xf   : > { %p190_p10 = pnand %p902_p6, %p189_p9 }
  0x10   : > { %p215_p11 = scmp.lt.s32.totalorder (!%p190_p10), %s1225_s20, 1  ;;  %v226_v0 = vld [vmem:[%s1508_s1] sm:$0xff] (!%p190_p10)  ;;  %vm271_vm0 = vcmask (!%p190_p10), 195584   ;;  %v1235_v1 = vmov (!%p190_p10), 0   ;;  %v237_v2 = vld [vmem:[%s1509_s2 + $0x10] sm:$0xff] (!%p190_p10)  ;;  %v236_v4 = vld [vmem:[%s1509_s2 + $0x8] sm:$0xff] (!%p190_p10) }
  0x11   : > { %193 = sbr.rel (%p190_p10) target bundleno = 995 (0x3e3), region = 36  ;;  %990 = vmatprep.mubr.msk.f32.mxu1 (!%p190_p10), %vm271_vm0, %v226_v0  ;;  %1118 = vset.pattern.permute.xlu1 (!%p190_p10), %v1235_v1  ;;  %v235_v3 = vld [vmem:[%s1509_s2] sm:$0xff] (!%p190_p10)  ;;  %v227_v9 = vld [vmem:[%s1508_s1 + $0x8] sm:$0xff] (!%p190_p10)  ;;  %v228_v10 = vld [vmem:[%s1508_s1 + $0x10] sm:$0xff] (!%p190_p10)  ;;  %s790_s3 = sld [smem:[#allocation4]] (!%p190_p10) }
  0x12   : > { %253 = vperm.xlu1 (!%p190_p10), %1118, %v237_v2   ;;  %1117 = vset.pattern.permute.xlu0 (!%p190_p10), %v1235_v1  ;;  %v229_v11 = vld [vmem:[%s1508_s1 + $0x18] sm:$0xff] (!%p190_p10)  ;;  %v230_v12 = vld [vmem:[%s1508_s1 + $0x20] sm:$0xff] (!%p190_p10)  ;;  %v231_v13 = vld [vmem:[%s1508_s1 + $0x28] sm:$0xff] (!%p190_p10)  ;;  %s940_s30 = sshll.u32 (!%p190_p10), %s1225_s20, 8  ;;  %s1236_s9 = smov (!%p190_p10), [#allocation5]  }
  0x13   : > { %243 = vperm.xlu0 (!%p190_p10), %1117, %v235_v3   ;;  %v238_v59 = vld [vmem:[%s1509_s2 + $0x18] sm:$0xff] (!%p190_p10)  ;;  %v239_v60 = vld [vmem:[%s1509_s2 + $0x20] sm:$0xff] (!%p190_p10)  ;;  %v240_v61 = vld [vmem:[%s1509_s2 + $0x28] sm:$0xff] (!%p190_p10)  ;;  %s1457_s7 = scalar_lea.hbm (!%p190_p10), %s1511_s4, %s940_s30 }
  0x17   : > { %248 = vperm.xlu0 (!%p190_p10), %1117, %v236_v4  }
  0x18   : > { %s216_s10 = scalar_select %p215_p11, %s1225_s20, 1 }
  0x1a   : > { %s1057_s11 = smul.u32 24, %s216_s10  ;;  %s1159_s10 = sshll.u32 %s1236_s9, 4  ;;  %s1160_s10 = int_to_ptr.vmem [resolvable:$false] %s1159_s10 }
  0x1c   : > { %s219_s16 = scalar_lea.vmem %s1507_s0, %s1057_s11  ;;  %s1161_s11 = scalar_lea.vmem %s1160_s10, 512 }
  0x1d   : > { %v1340_v5 = vld [vmem:[%s219_s16] sm:$0xff]  ;;  %v1342_v6 = vld [vmem:[%s219_s16 + $0x8] sm:$0xff]  ;;  %v234_v8 = vld [vmem:[%s219_s16 + $0x10] sm:$0xff]  ;;  %s212_s16 = sand.u32 1, %s1217_s18  }
  0x1e   : > { %v1049_v7 = vpack.c.bf16 %v1342_v6, %v1340_v5  ;;  %s903_s23 = sshll.u32 %s212_s16, 4  ;;  %s1461_s8 = scalar_lea.sflag [#allocation6], %s212_s16 }
  0x1f   : > { %s214_s25 = scalar_lea.vmem [#allocation5], %s903_s23 }
  0x20   : > { %1050 = vmatprep.subr.bf16.mxu1 %v1049_v7  ;;  %s821_s27 = sshll.u32 %s214_s25, 4  ;;  %s1452_s27 = int_to_ptr.vmem [resolvable:$true] %s821_s27 }
  0x21   : > { %1052 = vmatpush3.bf16.msra.mxu1 %v1049_v7  ;;  %s1155_s20 = scalar_lea.vmem %s1452_s27, 256  ;;  %p1162_p1 = scmp.lt.s32.totalorder %s1452_s27, %s1160_s10 }
  0x22   : > { %988 = vmatprep.subr.mxu1 %v234_v8  ;;  %p1156_p12 = scmp.ne.s32.totalorder %s1452_s27, %s1155_s20  ;;  %p1163_p2 = scmp.lt.s32.totalorder %s1161_s11, %s1155_s20 }
  0x24   : > { %p1157_p13 = pnand %p1156_p12, %p1307_p4  ;;  %p1164_p3 = por %p1163_p2, %p1162_p1 }
  0x25   : > { %989 = vmatpush3.msra.mxu1 %v234_v8 }
  0x26   : > { %991 = vmatmul.mubr.msk.f32.vlgmr.msra.gmra.mrb[0].mxu1 %vm271_vm0, %v227_v9  ;;  %p1158_p0 = pneg %p1157_p13 }
  0x27   : > { %993 = vmatprep.mubr.msk.f32.mxu1 %vm271_vm0, %v228_v10 }
  0x28   : > { %p1165_p5 = pnand %p1164_p3, %p1158_p0 }
  0x2a   : > { %994 = vmatmul.mubr.msk.f32.gmra.mrb[2].mxu1 %vm271_vm0, %v229_v11 }
  0x2b   : > { %996 = vmatprep.mubr.msk.f32.mxu1 %vm271_vm0, %v230_v12 }
  0x2e   : > { %997 = vmatmul.mubr.msk.f32.gmra.mrb[4].mxu1 %vm271_vm0, %v231_v13 }
  0x3b   : > { %415 = vxpose.xlu1.b32.start [1/3] (short) %v1340_v5, 128 }
  0x3f   : > { %416 = vxpose.xlu1.b32.cont [2/3] (short) %v1342_v6, 128 }
  0x43   : > { %417 = vxpose.xlu1.b32.end [3/3] (short) %v234_v8, 128 }
  0x91   : > { %v254_v14 = vpop.permute.xlu1 %253 }
  0x92   : > { %v244_v23 = vpop.permute.xlu0 %243 }
  0x96   : > { %v249_v25 = vpop.permute.xlu0 %248 }
  0xbb   : > { %v431_v15 = vpop.trf.xlu1 }
  0xbc   : > { %1005 = vmatprep.mubr.msk.f32.mxu1 %vm271_vm0, %v431_v15 }
  0xbf   : > { %v432_v16 = vpop.trf.xlu1 }
  0xc3   : > { %v433_v17 = vpop.trf.xlu1 }
  0xc7   : > { %v434_v18 = vpop.trf.xlu1 }
  0xcb   : > { %v435_v19 = vpop.trf.xlu1 }
  0xcf   : > { %v436_v20 = vpop.trf.xlu1 }
  0xd3   : > { %v437_v21 = vpop.trf.xlu1 }
  0xd7   : > { %v438_v22 = vpop.trf.xlu1 }
  0xdb   : > { %v439_v24 = vpop.trf.xlu1 }
  0xdf   : > { %v440_v29 = vpop.trf.xlu1 }
  0xe3   : > { %v441_v35 = vpop.trf.xlu1 }
  0xe7   : > { %v442_v36 = vpop.trf.xlu1 }
  0xeb   : > { %v443_v37 = vpop.trf.xlu1 }
  0xef   : > { %v444_v38 = vpop.trf.xlu1 }
  0xf3   : > { %v445_v39 = vpop.trf.xlu1 }
  0xf7   : > { %v446_v40 = vpop.trf.xlu1 }
  0xf9   : > { %v992_v26 = vpop.f32.mrb[0].mxu1 }
  0xfa   : > { %v362_v27 = vadd.f32 %v992_v26, %v249_v25  ;;  %v356_v28 = vpop.f32.mrb[1].mxu1 }
  0xfb   : > { %v357_v30 = vadd.f32 %v356_v28, %v244_v23 }
  0xfd   : > { %v1053_v31 = vpack.c.bf16 %v362_v27, %v357_v30  ;;  %v1369_v32 = vpop.f32.mrb[2].mxu1 }
  0xfe   : > { %v366_v33 = vpop.f32.mrb[3].mxu1 }
  0xff   : > { %v367_v34 = vadd.f32 %v366_v33, %v254_v14  ;;  %1054 = vmatprep.subr.bf16.mxu1 %v1053_v31 }
 0x100   : > { %1056 = vmatpush3.bf16.msra.mxu1 %v1053_v31 }
 0x101   : > { %1003 = vmatprep.subr.mxu1 %v367_v34  ;;  %v1386_v41 = vpop.f32.mrb[4].mxu1 }
 0x102   : > { %v1388_v42 = vpop.f32.mrb[5].mxu1 }
 0x104   : > { %1004 = vmatpush3.msra.mxu1 %v367_v34 }
 0x105   : > { %1006 = vmatmul.mubr.msk.f32.vlgmr.msra.gmra.mrb[6].mxu1 %vm271_vm0, %v432_v16 }
 0x106   : > { %1008 = vmatprep.mubr.msk.f32.mxu1 %vm271_vm0, %v433_v17 }
 0x109   : > { %1009 = vmatmul.mubr.msk.f32.gmra.mrb[8].mxu1 %vm271_vm0, %v434_v18 }
 0x10a   : > { %1011 = vmatprep.mubr.msk.f32.mxu1 %vm271_vm0, %v435_v19 }
 0x10d   : > { %1012 = vmatmul.mubr.msk.f32.gmra.mrb[10].mxu1 %vm271_vm0, %v436_v20 }
 0x10e   : > { %1014 = vmatprep.mubr.msk.f32.mxu1 %vm271_vm0, %v437_v21 }
 0x111   : > { %1015 = vmatmul.mubr.msk.f32.gmra.mrb[12].mxu1 %vm271_vm0, %v438_v22 }
 0x112   : > { %1017 = vmatprep.mubr.msk.f32.mxu1 %vm271_vm0, %v439_v24 }
 0x115   : > { %1018 = vmatmul.mubr.msk.f32.gmra.mrb[14].mxu1 %vm271_vm0, %v440_v29 }
 0x116   : > { %1020 = vmatprep.mubr.msk.f32.mxu1 %vm271_vm0, %v441_v35 }
 0x119   : > { %1021 = vmatmul.mubr.msk.f32.gmra.mrb[16].mxu1 %vm271_vm0, %v442_v36 }
 0x11a   : > { %1023 = vmatprep.mubr.msk.f32.mxu1 %vm271_vm0, %v443_v37 }
 0x11d   : > { %1024 = vmatmul.mubr.msk.f32.gmra.mrb[18].mxu1 %vm271_vm0, %v444_v38 }
 0x11e   : > { %1026 = vmatprep.mubr.msk.f32.mxu1 %vm271_vm0, %v445_v39 }
 0x121   : > { %1027 = vmatmul.mubr.msk.f32.gmra.mrb[20].mxu1 %vm271_vm0, %v446_v40 }
 0x1d8   : > { %v1007_v43 = vpop.f32.mrb[6].mxu1 }
 0x1d9   : > { %643 = vmax.xlane.f32.xlu0 %v1007_v43  ;;  %v562_v44 = vpop.f32.mrb[7].mxu1 }
 0x1dc   : > { %v1010_v45 = vpop.f32.mrb[8].mxu1 }
 0x1dd   : > { %641 = vmax.xlane.f32.xlu0 %v562_v44  ;;  %v572_v46 = vpop.f32.mrb[9].mxu1 }
 0x1e0   : > { %v1390_v47 = vpop.f32.mrb[10].mxu1 }
 0x1e1   : > { %647 = vmax.xlane.f32.xlu0 %v1010_v45  ;;  %651 = vmax.xlane.f32.xlu1 %v1390_v47  ;;  %v1393_v48 = vpop.f32.mrb[11].mxu1 }
 0x1e4   : > { %v1395_v49 = vpop.f32.mrb[12].mxu1 }
 0x1e5   : > { %645 = vmax.xlane.f32.xlu0 %v572_v46  ;;  %v1397_v50 = vpop.f32.mrb[13].mxu1 }
 0x1e8   : > { %v1399_v51 = vpop.f32.mrb[14].mxu1 }
 0x1e9   : > { %v1401_v52 = vpop.f32.mrb[15].mxu1 }
 0x1ec   : > { %v1403_v53 = vpop.f32.mrb[16].mxu1 }
 0x1ed   : > { %v1405_v54 = vpop.f32.mrb[17].mxu1 }
 0x1f0   : > { %v1407_v55 = vpop.f32.mrb[18].mxu1 }
 0x1f1   : > { %v1409_v56 = vpop.f32.mrb[19].mxu1 }
 0x1f4   : > { %v1411_v57 = vpop.f32.mrb[20].mxu1 }
 0x1f5   : > { %v1413_v58 = vpop.f32.mrb[21].mxu1 }
 0x1fb   : > { %258 = vperm.xlu0 %1117, %v238_v59  }
 0x1ff   : > { %263 = vperm.xlu0 %1117, %v239_v60  }
 0x21e   : > { %649 = vmax.xlane.f32.xlu0 %v1393_v48 }
 0x222   : > { %655 = vmax.xlane.f32.xlu0 %v1395_v49 }
 0x226   : > { %653 = vmax.xlane.f32.xlu0 %v1397_v50 }
 0x22a   : > { %659 = vmax.xlane.f32.xlu0 %v1399_v51 }
 0x22e   : > { %657 = vmax.xlane.f32.xlu0 %v1401_v52 }
 0x232   : > { %663 = vmax.xlane.f32.xlu0 %v1403_v53 }
 0x236   : > { %661 = vmax.xlane.f32.xlu0 %v1405_v54 }
 0x23a   : > { %667 = vmax.xlane.f32.xlu0 %v1407_v55 }
 0x23e   : > { %665 = vmax.xlane.f32.xlu0 %v1409_v56 }
 0x242   : > { %671 = vmax.xlane.f32.xlu0 %v1411_v57 }
 0x246   : > { %669 = vmax.xlane.f32.xlu0 %v1413_v58 }
 0x25c   : > { %268 = vperm.xlu0 %1117, %v240_v61  }
 0x266   : > { %v644_v62 = vpop.xlane.xlu0 %643 }
 0x267   : > { %v674_v63 = vsub.f32 %v1007_v43, %v644_v62 }
 0x269   : > { %v691_v0 = vmul.f32 1.442695, %v674_v63 }
 0x26a   : > { %v642_v1 = vpop.xlane.xlu0 %641 }
 0x26b   : > { %v673_v2 = vsub.f32 %v562_v44, %v642_v1  ;;  %1121 = vpow2.f32 %v691_v0 }
 0x26d   : > { %v689_v3 = vmul.f32 1.442695, %v673_v2 }
 0x26e   : > { %v648_v4 = vpop.xlane.xlu0 %647  ;;  %v652_v24 = vpop.xlane.xlu1 %651 }
 0x26f   : > { %1123 = vpow2.f32 %v689_v3  ;;  %v676_v7 = vsub.f32 %v1010_v45, %v648_v4  ;;  %v678_v25 = vsub.f32 %v1390_v47, %v652_v24 }
 0x271   : > { %v695_v8 = vmul.f32 1.442695, %v676_v7  ;;  %v699_v26 = vmul.f32 1.442695, %v678_v25 }
 0x272   : > { %v646_v9 = vpop.xlane.xlu0 %645 }
 0x273   : > { %v675_v10 = vsub.f32 %v572_v46, %v646_v9  ;;  %1125 = vpow2.f32 %v695_v8 }
 0x275   : > { %v693_v11 = vmul.f32 1.442695, %v675_v10  ;;  %v1122_v12 = vpop.eup %1121 }
 0x277   : > { %1127 = vpow2.f32 %v693_v11 }
 0x278   : > { %1129 = vpow2.f32 %v699_v26 }
 0x279   : > { %v1124_v13 = vpop.eup %1123 }
 0x27a   : > { %v259_v14 = vpop.permute.xlu0 %258  ;;  %v721_v15 = vpack.c.bf16 %v1122_v12, %v1124_v13 }
 0x27b   : > { %v372_v17 = vadd.f32 %v1369_v32, %v259_v14 }
 0x27c   : > { %1029 = vmatprep.subr.bf16.mxu0 %v721_v15 }
 0x27d   : > { %1030 = vmatpush3.bf16.xpose.msra.mxu0 %v721_v15  ;;  %v1126_v19 = vpop.eup %1125 }
 0x27e   : > { %v264_v16 = vpop.permute.xlu0 %263 }
 0x27f   : > { %v377_v18 = vadd.f32 %v1388_v42, %v264_v16 }
 0x281   : > { %v1128_v20 = vpop.eup %1127  ;;  %v944_v21 = vpack.c.bf16 %v377_v18, %v372_v17 }
 0x282   : > { %v722_v22 = vpack.c.bf16 %v1126_v19, %v1128_v20  ;;  %v1130_v38 = vpop.eup %1129 }
 0x283   : > { %945 = vst [vmem:[#allocation3] sm:$0xff] %v944_v21  }
 0x284   : > { %1031 = vmatprep.subr.bf16.mxu0 %v722_v22 }
 0x285   : > { %1032 = vmatpush3.bf16.xpose.msra.mxu0 %v722_v22  ;;  %v792_v22 = vlaneseq }
 0x28a   : > { %v1119_v23 = vld [vmem:[#allocation3] sm:$0xff]  }
 0x28b   : > { %1045 = vmatprep.mubr.bf16.mxu0 %v1119_v23 }
 0x2ab   : > { %v650_v27 = vpop.xlane.xlu0 %649 }
 0x2ac   : > { %v677_v28 = vsub.f32 %v1393_v48, %v650_v27 }
 0x2ae   : > { %v697_v29 = vmul.f32 1.442695, %v677_v28 }
 0x2af   : > { %v656_v30 = vpop.xlane.xlu0 %655 }
 0x2b0   : > { %1131 = vpow2.f32 %v697_v29  ;;  %v680_v31 = vsub.f32 %v1395_v49, %v656_v30  ;;  %v798_v29 = vstv %s790_s3 }
 0x2b2   : > { %v703_v32 = vmul.f32 1.442695, %v680_v31 }
 0x2b3   : > { %v654_v33 = vpop.xlane.xlu0 %653 }
 0x2b4   : > { %v679_v34 = vsub.f32 %v1397_v50, %v654_v33  ;;  %1133 = vpow2.f32 %v703_v32 }
 0x2b6   : > { %v701_v35 = vmul.f32 1.442695, %v679_v34 }
 0x2b7   : > { %v660_v36 = vpop.xlane.xlu0 %659 }
 0x2b8   : > { %1135 = vpow2.f32 %v701_v35  ;;  %v682_v37 = vsub.f32 %v1399_v51, %v660_v36 }
 0x2ba   : > { %v1132_v39 = vpop.eup %1131  ;;  %v707_v40 = vmul.f32 1.442695, %v682_v37 }
 0x2bb   : > { %v658_v42 = vpop.xlane.xlu0 %657  ;;  %v723_v43 = vpack.c.bf16 %v1130_v38, %v1132_v39 }
 0x2bc   : > { %v681_v44 = vsub.f32 %v1401_v52, %v658_v42  ;;  %1137 = vpow2.f32 %v707_v40 }
 0x2bd   : > { %1033 = vmatprep.subr.bf16.mxu0 %v723_v43 }
 0x2be   : > { %v705_v45 = vmul.f32 1.442695, %v681_v44  ;;  %1034 = vmatpush3.bf16.xpose.msra.mxu0 %v723_v43  ;;  %v1134_v48 = vpop.eup %1133 }
 0x2bf   : > { %v664_v46 = vpop.xlane.xlu0 %663 }
 0x2c0   : > { %1139 = vpow2.f32 %v705_v45  ;;  %v684_v47 = vsub.f32 %v1403_v53, %v664_v46 }
 0x2c2   : > { %v1136_v49 = vpop.eup %1135  ;;  %v711_v50 = vmul.f32 1.442695, %v684_v47 }
 0x2c3   : > { %v662_v59 = vpop.xlane.xlu0 %661  ;;  %v724_v51 = vpack.c.bf16 %v1134_v48, %v1136_v49 }
 0x2c4   : > { %v683_v60 = vsub.f32 %v1405_v54, %v662_v59  ;;  %1141 = vpow2.f32 %v711_v50 }
 0x2c5   : > { %1035 = vmatprep.subr.bf16.mxu0 %v724_v51 }
 0x2c6   : > { %v709_v61 = vmul.f32 1.442695, %v683_v60  ;;  %1036 = vmatpush3.bf16.xpose.msra.mxu0 %v724_v51  ;;  %v1138_v63 = vpop.eup %1137 }
 0x2c7   : > { %v668_v52 = vpop.xlane.xlu0 %667 }
 0x2c8   : > { %1143 = vpow2.f32 %v709_v61  ;;  %v686_v62 = vsub.f32 %v1407_v55, %v668_v52 }
 0x2ca   : > { %v1140_v0 = vpop.eup %1139  ;;  %v715_v1 = vmul.f32 1.442695, %v686_v62 }
 0x2cb   : > { %v666_v2 = vpop.xlane.xlu0 %665  ;;  %v725_v53 = vpack.c.bf16 %v1138_v63, %v1140_v0 }
 0x2cc   : > { %v685_v3 = vsub.f32 %v1409_v56, %v666_v2  ;;  %1145 = vpow2.f32 %v715_v1 }
 0x2cd   : > { %1037 = vmatprep.subr.bf16.mxu0 %v725_v53 }
 0x2ce   : > { %v713_v4 = vmul.f32 1.442695, %v685_v3  ;;  %1038 = vmatpush3.bf16.xpose.msra.mxu0 %v725_v53  ;;  %v1142_v8 = vpop.eup %1141 }
 0x2cf   : > { %v672_v54 = vpop.xlane.xlu0 %671 }
 0x2d0   : > { %1147 = vpow2.f32 %v713_v4  ;;  %v688_v7 = vsub.f32 %v1411_v57, %v672_v54 }
 0x2d2   : > { %v1144_v9 = vpop.eup %1143  ;;  %v719_v10 = vmul.f32 1.442695, %v688_v7 }
 0x2d3   : > { %v670_v11 = vpop.xlane.xlu0 %669  ;;  %v726_v55 = vpack.c.bf16 %v1142_v8, %v1144_v9 }
 0x2d4   : > { %v687_v12 = vsub.f32 %v1413_v58, %v670_v11  ;;  %1149 = vpow2.f32 %v719_v10 }
 0x2d5   : > { %1039 = vmatprep.subr.bf16.mxu0 %v726_v55 }
 0x2d6   : > { %v717_v13 = vmul.f32 1.442695, %v687_v12  ;;  %1040 = vmatpush3.bf16.xpose.msra.mxu0 %v726_v55  ;;  %v1146_v56 = vpop.eup %1145 }
 0x2d8   : > { %1151 = vpow2.f32 %v717_v13 }
 0x2da   : > { %v1148_v14 = vpop.eup %1147 }
 0x2db   : > { %v269_v15 = vpop.permute.xlu0 %268  ;;  %v727_v16 = vpack.c.bf16 %v1146_v56, %v1148_v14 }
 0x2dc   : > { %v382_v17 = vadd.f32 %v1386_v41, %v269_v15  ;;  %v793_v41 = vshrl.u32 %v792_v22, 7 }
 0x2dd   : > { %1041 = vmatprep.subr.bf16.mxu0 %v727_v16 }
 0x2de   : > { %v939_v57 = vpack.c.bf16 %v382_v17, %v382_v17  ;;  %1042 = vmatpush3.bf16.xpose.msra.mxu0 %v727_v16  ;;  %v1150_v18 = vpop.eup %1149  ;;  %v794_v26 = vsub.s32 0, %v793_v41 }
 0x2e0   : > { %403 = vst [vmem:[#allocation3 + $0x8] sm:$0xf] %v939_v57 }
 0x2e2   : > { %v1152_v19 = vpop.eup %1151 }
 0x2e3   : > { %v728_v20 = vpack.c.bf16 %v1150_v18, %v1152_v19 }
 0x2e5   : > { %1043 = vmatprep.subr.bf16.mxu0 %v728_v20 }
 0x2e6   : > { %1044 = vmatpush3.bf16.xpose.msra.mxu0 %v728_v20 }
 0x2e7   : > { %v1120_v58 = vld [vmem:[#allocation3 + $0x8] ss:$0 sps:$4 sm:$0xff]  }
 0x2ed   : > { %1046 = vmatmul.mubr.bf16.vlgmr.msra.gmra.mrb[0].mxu0 %v1120_v58 }
 0x3c0   : > { %v1047_v21 = vpop.f32.mrb[0].mxu0 }
 0x3c1   : > { %1153 = vrcp.f32 %v1047_v21  ;;  %v776_v23 = vpop.f32.mrb[1].mxu0 }
 0x3c2   : > { %v1048_v24 = vpop.f32.mrb[2].mxu0 }
 0x3c3   : > { %v779_v25 = vpop.f32.mrb[3].mxu0 }
 0x3cb   : > { %v1154_v27 = vpop.eup %1153 }
 0x3cc   : > { %v795_v28 = vrot.slane %v1154_v27, %v794_v26 }
 0x3ce   : > { %v796_v30 = vmul.f32 %v795_v28, %v776_v23  ;;  %v797_v31 = vmul.f32 %v795_v28, %v779_v25 }
 0x3d0   : > { %v799_v32 = vmul.f32 %v798_v29, %v796_v30  ;;  %v800_v33 = vmul.f32 %v798_v29, %v797_v31 }
 0x3d2   : > { %v801_v34 = vadd.f32 %v799_v32, %v1340_v5  ;;  %v802_v35 = vadd.f32 %v800_v33, %v1342_v6 }
 0x3d4   : > { %803 = vst [vmem:[%s214_s25] sm:$0xff] %v801_v34  ;;  %804 = vst [vmem:[%s214_s25 + $0x8] sm:$0xff] %v802_v35 }
 0x3d5   : > { %1168 = shalt.err (!%p1165_p5)
}
 0x3d6   : > { %s1169_s12 = scalar_lea.hbm %s1457_s7, 256  ;;  %s1173_s15 = scalar_lea.hbm %s1511_s4, 512 }
 0x3d7   : > { %p1170_p6 = scmp.ne.s32.totalorder %s1457_s7, %s1169_s12  ;;  %p1174_p10 = scmp.lt.u32.totalorder %s1457_s7, %s1511_s4 }
 0x3d8   : > { %p1175_p11 = scmp.lt.u32.totalorder %s1173_s15, %s1169_s12  ;;  %p1177_p13 = scmp.lt.u32.totalorder %s1169_s12, %s1457_s7 }
 0x3d9   : > { %p1171_p7 = pnand %p1170_p6, %p1307_p4 }
 0x3da   : > { %p1176_p12 = por %p1175_p11, %p1174_p10 }
 0x3db   : > { %p1172_p9 = pneg %p1171_p7 }
 0x3dc   : > { %p1178_p0 = por %p1177_p13, %p1176_p12 }
 0x3de   : > { %p1179_p1 = pnand %p1178_p0, %p1172_p9 }
 0x3e0   : > { %1182 = shalt.err (!%p1179_p1)
}
 0x3e1   : > { %s1237_s23 = smov 128   ;;  %s1238_s25 = smov 8  }
 0x3e2   : > { %1058 = dma.vmem_to_hbm [thread:$0]  (%p1307_p4), %s1452_s27, 256, %s1457_s7, %s1461_s8, %s1237_s23, %s1237_s23, %s1238_s25  }
 0x3e3 PF: > { %p1064_p2 = scmp.ge.s32.totalorder %s1233_s22, 2  ;;  %s836_s30 = sand.u32 1, %s1213_s17  }
 0x3e4   : > { %s837_s5 = scalar_lea.sflag [#allocation6], %s836_s30 }
 0x3e5   : > { %p1061_p3 = pnand %p1064_p2, %p1314_p8 }
 0x3e7   : > { %1208 = dma.done.wait (!%p1061_p3), %s837_s5, 256  }
 0x3e8   : > { %1210 = vsyncadd (!%p1061_p3), %s837_s5, 4294967040  ;;  %s18_s22 = sadd.s32 1, %s1233_s22   ;;  %s1514_s17 = smov %s1217_s18 }
 0x3e9   : > { %p15_p5 = scmp.ge.s32.totalorder %s18_s22, 4   ;;  %s1515_s18 = smov %s1221_s19 }
 0x3ea   : > { %s1516_s19 = smov %s1320_s29  ;;  %s1517_s20 = smov %s1229_s21 }
 0x3eb   : > { %s1518_s21 = smov %s1520_s24  ;;  %17 = sbr.rel (!%p15_p5) target bundleno = 6 (0x6), region = 76 }
 0x3f2   :  { %842 = vsyncpa [#allocation6], 1 }
 0x3f3   :  { %844 = vsyncpa [#allocation6 + $0x1], 1 }

</bundles_post_ra>
